<compile_context>
chip_gen: v6e
topology: v6e:2x2x1
jax: 0.10.0
libtpu: 0.0.40
codegen_flags: <defaults>
</compile_context>

<pallas_src>
import functools

import jax
import jax.numpy as jnp
from jax.experimental import pallas as pl
from jax.experimental.pallas import tpu as pltpu

C_HALF = 256              # channels of x_global and of c
C_IN = 2 * C_HALF         # 512 = concat channel dim
C1, C2, C3 = 128, 64, 32  # layer widths


def _mlp_kernel(xg_ref, c_ref, w1a_ref, w1b_ref, w2_ref, w3_ref, w4_ref,
                b4_ref, o_ref):
    """Fused 3x(relu-matmul) + linear head on one batch tile."""
    # Layer 1: split-concat matmul, bf16 operands, f32 accumulation on the MXU.
    h = jnp.dot(xg_ref[...], w1a_ref[...], preferred_element_type=jnp.float32)
    h = h + jnp.dot(c_ref[...], w1b_ref[...],
                    preferred_element_type=jnp.float32)
    h = jnp.maximum(h, 0.0)
    # Layers 2 and 3.
    h = jnp.dot(h.astype(jnp.bfloat16), w2_ref[...],
                preferred_element_type=jnp.float32)
    h = jnp.maximum(h, 0.0)
    h = jnp.dot(h.astype(jnp.bfloat16), w3_ref[...],
                preferred_element_type=jnp.float32)
    h = jnp.maximum(h, 0.0)
    # Layer 4 (32 -> 1): VPU multiply + lane reduction (skip a wasteful N=1 MXU
    # pass); bias is a scalar read from SMEM.
    out = jnp.sum(h * w4_ref[...], axis=-1, keepdims=True)   # (tb, 1) f32
    o_ref[...] = (out + b4_ref[0, 0]).astype(o_ref.dtype)


def _round_up(x, m):
    return (x + m - 1) // m * m


@functools.partial(jax.jit, static_argnames=("tb",))
def globalinfoloss_net_256(x_global, c, w1t, w2t, w3t, w4, b4, *, tb=256):
    """Pallas implementation of GlobalinfolossNet256.forward.

    Args:
      x_global: (B, 256) float32
      c:        (B, 256) float32
      w1t: (512, 128), w2t: (128, 64), w3t: (64, 32)  -- conv weights, pre-transposed to (C_in, C_out)
      w4:  (1, 32)  -- l0.weight (already (out, in) = (1, 32))
      b4:  (1,)     -- l0.bias
      tb:  batch tile (rows per grid step); clamped/padded automatically.
    Returns:
      (B, 1) float32
    """
    B = x_global.shape[0]

    # Clamp the batch tile for small batches (multiple of 16 for bf16 sublane
    # packing) and pad B up to a multiple of the effective tile.
    tb_eff = min(tb, _round_up(B, 16))
    b_pad = _round_up(B, tb_eff)

    xg = x_global.astype(jnp.bfloat16)
    cc = c.astype(jnp.bfloat16)
    if b_pad != B:
        pad = ((0, b_pad - B), (0, 0))
        xg = jnp.pad(xg, pad)
        cc = jnp.pad(cc, pad)

    # Split W1 row-wise so the wrapper never materializes cat([x_global, c]).
    w1a = w1t[:C_HALF].astype(jnp.bfloat16)   # (256, 128) — multiplies x_global
    w1b = w1t[C_HALF:].astype(jnp.bfloat16)   # (256, 128) — multiplies c
    w2b = w2t.astype(jnp.bfloat16)
    w3b = w3t.astype(jnp.bfloat16)
    w4r = w4.reshape(1, C3).astype(jnp.float32)   # kept f32 (VPU reduction)
    b4s = b4.reshape(1, 1).astype(jnp.float32)    # scalar bias -> SMEM

    grid = (b_pad // tb_eff,)

    flops = 2 * b_pad * (C_IN * C1 + C1 * C2 + C2 * C3 + C3)
    bytes_accessed = (2 * b_pad * C_HALF * 2                       # bf16 activations
                      + (C_IN * C1 + C1 * C2 + C2 * C3) * 2        # bf16 weights
                      + C3 * 4 + 4                                  # f32 w4 + bias
                      + b_pad * 4)                                  # f32 output

    out = pl.pallas_call(
        _mlp_kernel,
        out_shape=jax.ShapeDtypeStruct((b_pad, 1), jnp.float32),
        grid_spec=pltpu.PrefetchScalarGridSpec(
            num_scalar_prefetch=0,
            grid=grid,
            in_specs=[
                pl.BlockSpec((tb_eff, C_HALF), lambda i: (i, 0)),   # x_global tile
                pl.BlockSpec((tb_eff, C_HALF), lambda i: (i, 0)),   # c tile
                pl.BlockSpec((C_HALF, C1), lambda i: (0, 0)),       # W1 rows for x_global
                pl.BlockSpec((C_HALF, C1), lambda i: (0, 0)),       # W1 rows for c
                pl.BlockSpec((C1, C2), lambda i: (0, 0)),           # W2^T
                pl.BlockSpec((C2, C3), lambda i: (0, 0)),           # W3^T
                pl.BlockSpec((1, C3), lambda i: (0, 0)),            # W4 row (f32)
                pl.BlockSpec(memory_space=pltpu.MemorySpace.SMEM),  # bias scalar
            ],
            out_specs=pl.BlockSpec((tb_eff, 1), lambda i: (i, 0)),
        ),
        compiler_params=pltpu.CompilerParams(
            dimension_semantics=("parallel",)),
        cost_estimate=pl.CostEstimate(
            flops=flops, transcendentals=0, bytes_accessed=bytes_accessed),
    )(xg, cc, w1a, w1b, w2b, w3b, w4r, b4s)

    return out[:B]


def _reference_matched(x_global, c, w1t, w2t, w3t, w4, b4):
    """Pure-JAX reference matching the kernel numerics (bf16 in, f32 acc)."""
    xx = jnp.concatenate([x_global, c], axis=1).astype(jnp.bfloat16)
    h = jax.nn.relu(jnp.dot(xx, w1t.astype(jnp.bfloat16),
                            preferred_element_type=jnp.float32))
    h = jax.nn.relu(jnp.dot(h.astype(jnp.bfloat16), w2t.astype(jnp.bfloat16),
                            preferred_element_type=jnp.float32))
    h = jax.nn.relu(jnp.dot(h.astype(jnp.bfloat16), w3t.astype(jnp.bfloat16),
                            preferred_element_type=jnp.float32))
    return jnp.sum(h * w4, axis=-1, keepdims=True) + b4.reshape(1, 1)


def _reference_f32(x_global, c, w1t, w2t, w3t, w4, b4):
    """Full-f32 reference (mirrors the PyTorch module exactly)."""
    xx = jnp.concatenate([x_global, c], axis=1)
    h = jax.nn.relu(xx @ w1t)
    h = jax.nn.relu(h @ w2t)
    h = jax.nn.relu(h @ w3t)
    return h @ w4.T + b4.reshape(1, 1)


if __name__ == "__main__":
    key = jax.random.PRNGKey(0)
    k_xg, k_c, k1, k2, k3, k4, kb = jax.random.split(key, 7)

    # Deterministic synthetic parameters (conv weights pre-transposed to (C_in, C_out)).
    w1t = jax.random.normal(k1, (C_IN, C1), jnp.float32) / jnp.sqrt(C_IN)
    w2t = jax.random.normal(k2, (C1, C2), jnp.float32) / jnp.sqrt(C1)
    w3t = jax.random.normal(k3, (C2, C3), jnp.float32) / jnp.sqrt(C2)
    w4 = jax.random.normal(k4, (1, C3), jnp.float32) / jnp.sqrt(C3)
    b4 = jax.random.normal(kb, (1,), jnp.float32) * 0.1

    def run_case(b, kx, kc):
        xg = jax.random.normal(kx, (b, C_HALF), dtype=jnp.float32)
        cv = jax.random.normal(kc, (b, C_HALF), dtype=jnp.float32)
        out = jax.block_until_ready(
            globalinfoloss_net_256(xg, cv, w1t, w2t, w3t, w4, b4))
        assert out.shape == (b, 1)
        ref_m = _reference_matched(xg, cv, w1t, w2t, w3t, w4, b4)
        ref_f = _reference_f32(xg, cv, w1t, w2t, w3t, w4, b4)
        assert jnp.allclose(out, ref_m, atol=1e-3, rtol=1e-3), \
            "mismatch vs bf16-matched reference"
        assert jnp.allclose(out, ref_f, atol=1e-1, rtol=1e-1), \
            "mismatch vs f32 reference"

    # Small batch (single clamped tile) and a ragged multi-tile batch (padding path).
    run_case(40, k_xg, k_c)
    k_xg2, k_c2 = jax.random.split(jax.random.PRNGKey(1))
    run_case(520, k_xg2, k_c2)

    print("KERNEL_OK")
</pallas_src>

<mosaic_0001>
module attributes {stable_mosaic.version = 11 : i64} {
  func.func @_mlp_kernel(%arg0: i32, %arg1: memref<48x256xbf16, #tpu.memory_space<vmem>>, %arg2: memref<48x256xbf16, #tpu.memory_space<vmem>>, %arg3: memref<256x128xbf16, #tpu.memory_space<vmem>>, %arg4: memref<256x128xbf16, #tpu.memory_space<vmem>>, %arg5: memref<128x64xbf16, #tpu.memory_space<vmem>>, %arg6: memref<64x32xbf16, #tpu.memory_space<vmem>>, %arg7: memref<1x32xf32, #tpu.memory_space<vmem>>, %arg8: memref<1x1xf32, #tpu.memory_space<smem>>, %arg9: memref<48x1xf32, #tpu.memory_space<vmem>>) attributes {dimension_semantics = [#tpu.dimension_semantics<parallel>], iteration_bounds = array<i64: 1>, scalar_prefetch = 0 : i64, scratch_operands = 0 : i64, tpu.core_type = #tpu.core_type<tc>, window_params = [{transform_indices = @transform_0, window_bounds = array<i64: 48, 256>}, {transform_indices = @transform_1, window_bounds = array<i64: 48, 256>}, {pipeline_mode = #tpu.pipeline_mode<synchronous>, transform_indices = @transform_2, window_bounds = array<i64: 256, 128>}, {pipeline_mode = #tpu.pipeline_mode<synchronous>, transform_indices = @transform_3, window_bounds = array<i64: 256, 128>}, {pipeline_mode = #tpu.pipeline_mode<synchronous>, transform_indices = @transform_4, window_bounds = array<i64: 128, 64>}, {pipeline_mode = #tpu.pipeline_mode<synchronous>, transform_indices = @transform_5, window_bounds = array<i64: 64, 32>}, {pipeline_mode = #tpu.pipeline_mode<synchronous>, transform_indices = @transform_6, window_bounds = array<i64: 1, 32>}, {transform_indices = @transform_7, window_bounds = array<i64: 1, 1>}, {transform_indices = @transform_8, window_bounds = array<i64: 48, 1>}]} {
    %c0 = arith.constant 0 : index
    %c0_0 = arith.constant 0 : index
    %0 = vector.load %arg1[%c0, %c0_0] : memref<48x256xbf16, #tpu.memory_space<vmem>>, vector<48x256xbf16>
    %c0_1 = arith.constant 0 : index
    %c0_2 = arith.constant 0 : index
    %1 = vector.load %arg3[%c0_1, %c0_2] : memref<256x128xbf16, #tpu.memory_space<vmem>>, vector<256x128xbf16>
    %cst = arith.constant dense<0.000000e+00> : vector<48x128xf32>
    %2 = tpu.matmul %0, %1, %cst {dimension_numbers = #tpu.dot_dimension_numbers<[1], [0], [0], [1], [0, 0, 1, 1], [], []>} : vector<48x256xbf16>, vector<256x128xbf16>, vector<48x128xf32> -> vector<48x128xf32>
    %c0_3 = arith.constant 0 : index
    %c0_4 = arith.constant 0 : index
    %3 = vector.load %arg2[%c0_3, %c0_4] : memref<48x256xbf16, #tpu.memory_space<vmem>>, vector<48x256xbf16>
    %c0_5 = arith.constant 0 : index
    %c0_6 = arith.constant 0 : index
    %4 = vector.load %arg4[%c0_5, %c0_6] : memref<256x128xbf16, #tpu.memory_space<vmem>>, vector<256x128xbf16>
    %cst_7 = arith.constant dense<0.000000e+00> : vector<48x128xf32>
    %5 = tpu.matmul %3, %4, %cst_7 {dimension_numbers = #tpu.dot_dimension_numbers<[1], [0], [0], [1], [0, 0, 1, 1], [], []>} : vector<48x256xbf16>, vector<256x128xbf16>, vector<48x128xf32> -> vector<48x128xf32>
    %6 = arith.addf %2, %5 : vector<48x128xf32>
    %cst_8 = arith.constant 0.000000e+00 : f32
    %7 = vector.broadcast %cst_8 : f32 to vector<48x128xf32>
    %8 = arith.maximumf %6, %7 : vector<48x128xf32>
    %9 = arith.truncf %8 : vector<48x128xf32> to vector<48x128xbf16>
    %c0_9 = arith.constant 0 : index
    %c0_10 = arith.constant 0 : index
    %10 = vector.load %arg5[%c0_9, %c0_10] : memref<128x64xbf16, #tpu.memory_space<vmem>>, vector<128x64xbf16>
    %cst_11 = arith.constant dense<0.000000e+00> : vector<48x64xf32>
    %11 = tpu.matmul %9, %10, %cst_11 {dimension_numbers = #tpu.dot_dimension_numbers<[1], [0], [0], [1], [0, 0, 1, 1], [], []>} : vector<48x128xbf16>, vector<128x64xbf16>, vector<48x64xf32> -> vector<48x64xf32>
    %cst_12 = arith.constant 0.000000e+00 : f32
    %12 = vector.broadcast %cst_12 : f32 to vector<48x64xf32>
    %13 = arith.maximumf %11, %12 : vector<48x64xf32>
    %14 = arith.truncf %13 : vector<48x64xf32> to vector<48x64xbf16>
    %c0_13 = arith.constant 0 : index
    %c0_14 = arith.constant 0 : index
    %15 = vector.load %arg6[%c0_13, %c0_14] : memref<64x32xbf16, #tpu.memory_space<vmem>>, vector<64x32xbf16>
    %cst_15 = arith.constant dense<0.000000e+00> : vector<48x32xf32>
    %16 = tpu.matmul %14, %15, %cst_15 {dimension_numbers = #tpu.dot_dimension_numbers<[1], [0], [0], [1], [0, 0, 1, 1], [], []>} : vector<48x64xbf16>, vector<64x32xbf16>, vector<48x32xf32> -> vector<48x32xf32>
    %cst_16 = arith.constant 0.000000e+00 : f32
    %17 = vector.broadcast %cst_16 : f32 to vector<48x32xf32>
    %18 = arith.maximumf %16, %17 : vector<48x32xf32>
    %c0_17 = arith.constant 0 : index
    %c0_18 = arith.constant 0 : index
    %19 = vector.load %arg7[%c0_17, %c0_18] : memref<1x32xf32, #tpu.memory_space<vmem>>, vector<1x32xf32>
    %20 = vector.broadcast %19 : vector<1x32xf32> to vector<48x32xf32>
    %21 = arith.mulf %18, %20 : vector<48x32xf32>
    %cst_19 = arith.constant dense<0.000000e+00> : vector<48xf32>
    %22 = vector.multi_reduction <add>, %21, %cst_19 [1] : vector<48x32xf32> to vector<48xf32>
    %23 = vector.shape_cast %22 : vector<48xf32> to vector<48x1xf32>
    %c0_20 = arith.constant 0 : index
    %c0_21 = arith.constant 0 : index
    %24 = memref.load %arg8[%c0_20, %c0_21] : memref<1x1xf32, #tpu.memory_space<smem>>
    %25 = vector.broadcast %24 : f32 to vector<48x1xf32>
    %26 = arith.addf %23, %25 : vector<48x1xf32>
    %c0_22 = arith.constant 0 : index
    %c0_23 = arith.constant 0 : index
    %27 = vector.load %arg9[%c0_22, %c0_23] : memref<48x1xf32, #tpu.memory_space<vmem>>, vector<48x1xf32>
    tpu.vector_store %arg9[%c0_22, %c0_23], %26 {strides = array<i32>} : memref<48x1xf32, #tpu.memory_space<vmem>>, vector<48x1xf32>,
    return
  }
  func.func @transform_0(%arg0: i32) -> (i32, i32) {
    %c0_i32 = arith.constant 0 : i32
    %c0_i32_0 = arith.constant 0 : i32
    return %arg0, %c0_i32 : i32, i32
  }
  func.func @transform_1(%arg0: i32) -> (i32, i32) {
    %c0_i32 = arith.constant 0 : i32
    %c0_i32_0 = arith.constant 0 : i32
    return %arg0, %c0_i32 : i32, i32
  }
  func.func @transform_2(%arg0: i32) -> (i32, i32) {
    %c0_i32 = arith.constant 0 : i32
    %c0_i32_0 = arith.constant 0 : i32
    %c0_i32_1 = arith.constant 0 : i32
    return %c0_i32, %c0_i32_0 : i32, i32
  }
  func.func @transform_3(%arg0: i32) -> (i32, i32) {
    %c0_i32 = arith.constant 0 : i32
    %c0_i32_0 = arith.constant 0 : i32
    %c0_i32_1 = arith.constant 0 : i32
    return %c0_i32, %c0_i32_0 : i32, i32
  }
  func.func @transform_4(%arg0: i32) -> (i32, i32) {
    %c0_i32 = arith.constant 0 : i32
    %c0_i32_0 = arith.constant 0 : i32
    %c0_i32_1 = arith.constant 0 : i32
    return %c0_i32, %c0_i32_0 : i32, i32
  }
  func.func @transform_5(%arg0: i32) -> (i32, i32) {
    %c0_i32 = arith.constant 0 : i32
    %c0_i32_0 = arith.constant 0 : i32
    %c0_i32_1 = arith.constant 0 : i32
    return %c0_i32, %c0_i32_0 : i32, i32
  }
  func.func @transform_6(%arg0: i32) -> (i32, i32) {
    %c0_i32 = arith.constant 0 : i32
    %c0_i32_0 = arith.constant 0 : i32
    %c0_i32_1 = arith.constant 0 : i32
    return %c0_i32, %c0_i32_0 : i32, i32
  }
  func.func @transform_7(%arg0: i32) -> (i32, i32) {
    %c0_i32 = arith.constant 0 : i32
    %c0_i32_0 = arith.constant 0 : i32
    %c0_i32_1 = arith.constant 0 : i32
    return %c0_i32, %c0_i32_0 : i32, i32
  }
  func.func @transform_8(%arg0: i32) -> (i32, i32) {
    %c0_i32 = arith.constant 0 : i32
    %c0_i32_0 = arith.constant 0 : i32
    return %arg0, %c0_i32 : i32, i32
  }
}

</mosaic_0001>

<bundles_post_ra>
// kernel: globalinfoloss_net_256.1
= control target key start
LH: loop header
LB: loop body
LE: loop exit
PB: predicated region body
PF: predicated region fallthrough
CT: control target
= control target key end

     0   :  { %v1026_v34 = vmov 0.0   ;;  %vm1027_vm0 = vmmov 0   ;;  %vm644_vm1 = vcmask 523264   ;;  %vm730_vm2 = vcmask 261120   ;;  %s1304_s3 = inlined_call_operand.vmem [shape: bf16[256,128], index: 3, kind: input, shape index: {}]   ;;  %s1305_s2 = inlined_call_operand.vmem [shape: bf16[256,128], index: 2, kind: input, shape index: {}]   ;;  %s1306_s1 = inlined_call_operand.vmem [shape: bf16[48,256], index: 1, kind: input, shape index: {}]   ;;  %s1307_s0 = inlined_call_operand.vmem [shape: bf16[48,256], index: 0, kind: input, shape index: {}]   ;;  %s1308_s4 = inlined_call_operand.vmem [shape: bf16[128,64], index: 4, kind: input, shape index: {}]   ;;  %s1309_s5 = inlined_call_operand.vmem [shape: bf16[64,32], index: 5, kind: input, shape index: {}]   ;;  %s1310_s6 = inlined_call_operand.vmem [shape: f32[1,32], index: 6, kind: input, shape index: {}]   ;;  %s1311_s7 = inlined_call_operand.<no memory space> [shape: f32[1,1], index: 7, kind: input, shape index: {}]   ;;  %s1312_s8 = inlined_call_operand.vmem [shape: f32[48,1], index: 8, kind: output, shape index: {}]  }
   0x1   :  { %v964_v0 = vld [vmem:[%s1304_s3 + $0x78] sm:$0xff]   ;;  %v968_v4 = vld [vmem:[%s1304_s3 + $0x70] sm:$0xff]   ;;  %v972_v8 = vld [vmem:[%s1304_s3 + $0x68] sm:$0xff]   ;;  %vm757_vm3 = vcmask 7168  }
   0x2   :  { %v965_v1 = vld [vmem:[%s1305_s2 + $0x78] sm:$0xff]   ;;  %828 = vmatprep.subr.bf16.mxu0 %v964_v0  ;;  %v969_v5 = vld [vmem:[%s1305_s2 + $0x70] sm:$0xff]   ;;  %v973_v9 = vld [vmem:[%s1305_s2 + $0x68] sm:$0xff]  }
   0x3   :  { %v966_v2 = vld [vmem:[%s1304_s3 + $0x38] sm:$0xff]   ;;  %862 = vmatprep.subr.bf16.mxu1 %v965_v1  ;;  %v970_v6 = vld [vmem:[%s1304_s3 + $0x30] sm:$0xff]   ;;  %v974_v10 = vld [vmem:[%s1304_s3 + $0x28] sm:$0xff]  }
   0x4   :  { %v967_v3 = vld [vmem:[%s1305_s2 + $0x38] sm:$0xff]   ;;  %829 = vmatpush3.bf16.msra.mxu0 %v966_v2  ;;  %v971_v7 = vld [vmem:[%s1305_s2 + $0x30] sm:$0xff]   ;;  %v975_v11 = vld [vmem:[%s1305_s2 + $0x28] sm:$0xff]  }
   0x5   :  { %863 = vmatpush3.bf16.msra.mxu1 %v967_v3  ;;  %830 = vmatprep.subr.bf16.mxu0 %v968_v4  ;;  %v976_v12 = vld [vmem:[%s1304_s3 + $0x60] sm:$0xff]   ;;  %v980_v16 = vld [vmem:[%s1304_s3 + $0x58] sm:$0xff]   ;;  %v984_v20 = vld [vmem:[%s1304_s3 + $0x50] sm:$0xff]  }
   0x6   :  { %864 = vmatprep.subr.bf16.mxu1 %v969_v5  ;;  %v977_v13 = vld [vmem:[%s1305_s2 + $0x60] sm:$0xff]   ;;  %v981_v17 = vld [vmem:[%s1305_s2 + $0x58] sm:$0xff]   ;;  %v985_v21 = vld [vmem:[%s1305_s2 + $0x50] sm:$0xff]  }
   0x7   :  { %v978_v14 = vld [vmem:[%s1304_s3 + $0x20] sm:$0xff]   ;;  %v982_v18 = vld [vmem:[%s1304_s3 + $0x18] sm:$0xff]   ;;  %v986_v22 = vld [vmem:[%s1304_s3 + $0x10] sm:$0xff]  }
   0x8   :  { %831 = vmatpush3.bf16.msra.mxu0 %v970_v6  ;;  %v979_v15 = vld [vmem:[%s1305_s2 + $0x20] sm:$0xff]   ;;  %v983_v19 = vld [vmem:[%s1305_s2 + $0x18] sm:$0xff]   ;;  %v987_v23 = vld [vmem:[%s1305_s2 + $0x10] sm:$0xff]  }
   0x9   :  { %865 = vmatpush3.bf16.msra.mxu1 %v971_v7  ;;  %832 = vmatprep.subr.bf16.mxu0 %v972_v8  ;;  %v988_v24 = vld [vmem:[%s1304_s3 + $0x48] sm:$0xff]   ;;  %v992_v28 = vld [vmem:[%s1304_s3 + $0x40] sm:$0xff]   ;;  %v1002_v37 = vld [vmem:[%s1306_s1 + $0x14] ss:$8 sps:$4 sm:$0xff]  }
   0xa   :  { %866 = vmatprep.subr.bf16.mxu1 %v973_v9  ;;  %v989_v25 = vld [vmem:[%s1305_s2 + $0x48] sm:$0xff]   ;;  %v993_v29 = vld [vmem:[%s1305_s2 + $0x40] sm:$0xff]   ;;  %v1004_v38 = vld [vmem:[%s1307_s0 + $0x14] ss:$8 sps:$4 sm:$0xff]  }
   0xb   :  { %v990_v26 = vld [vmem:[%s1304_s3 + $0x8] sm:$0xff]   ;;  %v994_v30 = vld [vmem:[%s1304_s3] sm:$0xff]   ;;  %v1006_v39 = vld [vmem:[%s1306_s1 + $0x10] ss:$8 sps:$4 sm:$0xff]  }
   0xc   :  { %833 = vmatpush3.bf16.msra.mxu0 %v974_v10  ;;  %v991_v27 = vld [vmem:[%s1305_s2 + $0x8] sm:$0xff]   ;;  %v995_v31 = vld [vmem:[%s1305_s2] sm:$0xff]   ;;  %v1007_v40 = vld [vmem:[%s1307_s0 + $0x10] ss:$8 sps:$4 sm:$0xff]  }
   0xd   :  { %867 = vmatpush3.bf16.msra.mxu1 %v975_v11  ;;  %834 = vmatprep.subr.bf16.mxu0 %v976_v12  ;;  %v996_v32 = vld [vmem:[%s1306_s1] ss:$8 sps:$4 sm:$0xff]   ;;  %v998_v33 = vld [vmem:[%s1306_s1 + $0x4] ss:$8 sps:$4 sm:$0xff]   ;;  %v1014_v42 = vld [vmem:[%s1308_s4 + $0x38] sm:$0xff]  }
   0xe   :  { %868 = vmatprep.subr.bf16.mxu1 %v977_v13  ;;  %v999_v35 = vld [vmem:[%s1307_s0] ss:$8 sps:$4 sm:$0xff]   ;;  %v1001_v36 = vld [vmem:[%s1307_s0 + $0x4] ss:$8 sps:$4 sm:$0xff]   ;;  %265 = vmatprep.mubr.bf16.mxu0 %v998_v33  ;;  %v1015_v44 = vld [vmem:[%s1308_s4 + $0x30] sm:$0xff]  }
   0xf   :  { %448 = vmatprep.mubr.bf16.mxu1 %v1001_v36  ;;  %v1008_v41 = vld [vmem:[%s1306_s1 + $0x24] ss:$8 sps:$4 sm:$0xff]   ;;  %v1012_v46 = vld [vmem:[%s1306_s1 + $0x20] ss:$8 sps:$4 sm:$0xff]   ;;  %v1018_v49 = vld [vmem:[%s1308_s4 + $0x18] sm:$0xff]  }
  0x10   :  { %835 = vmatpush3.bf16.msra.mxu0 %v978_v14  ;;  %v1010_v43 = vld [vmem:[%s1307_s0 + $0x24] ss:$8 sps:$4 sm:$0xff]   ;;  %v1013_v47 = vld [vmem:[%s1307_s0 + $0x20] ss:$8 sps:$4 sm:$0xff]   ;;  %v1019_v50 = vld [vmem:[%s1308_s4 + $0x10] sm:$0xff]  }
  0x11   :  { %869 = vmatpush3.bf16.msra.mxu1 %v979_v15  ;;  %836 = vmatprep.subr.bf16.mxu0 %v980_v16  ;;  %v1016_v45 = vld [vmem:[%s1308_s4 + $0x28] sm:$0xff]   ;;  %v1017_v48 = vld [vmem:[%s1308_s4 + $0x20] sm:$0xff]   ;;  %v1022_v53 = vld [vmem:[%s1309_s5 + $0x18] sm:$0xff]  }
  0x12   :  { %870 = vmatprep.subr.bf16.mxu1 %v981_v17  ;;  %v1020_v51 = vld [vmem:[%s1308_s4 + $0x8] sm:$0xff]   ;;  %v1021_v52 = vld [vmem:[%s1308_s4] sm:$0xff]   ;;  %v1023_v54 = vld [vmem:[%s1309_s5 + $0x10] sm:$0xff]  }
  0x13   :  { %v1024_v55 = vld [vmem:[%s1309_s5 + $0x8] sm:$0xff]  }
  0x14   :  { %837 = vmatpush3.bf16.msra.mxu0 %v982_v18 }
  0x15   :  { %871 = vmatpush3.bf16.msra.mxu1 %v983_v19  ;;  %838 = vmatprep.subr.bf16.mxu0 %v984_v20 }
  0x16   :  { %872 = vmatprep.subr.bf16.mxu1 %v985_v21 }
  0x18   :  { %839 = vmatpush3.bf16.msra.mxu0 %v986_v22 }
  0x19   :  { %873 = vmatpush3.bf16.msra.mxu1 %v987_v23  ;;  %840 = vmatprep.subr.bf16.mxu0 %v988_v24 }
  0x1a   :  { %874 = vmatprep.subr.bf16.mxu1 %v989_v25 }
  0x1c   :  { %841 = vmatpush3.bf16.msra.mxu0 %v990_v26 }
  0x1d   :  { %875 = vmatpush3.bf16.msra.mxu1 %v991_v27  ;;  %842 = vmatprep.subr.bf16.mxu0 %v992_v28 }
  0x1e   :  { %876 = vmatprep.subr.bf16.mxu1 %v993_v29 }
  0x20   :  { %843 = vmatpush3.bf16.msra.mxu0 %v994_v30 }
  0x21   :  { %877 = vmatpush3.bf16.msra.mxu1 %v995_v31  ;;  %914 = vmatprep.subr.bf16.mxu0 %v1026_v34 }
  0x22   :  { %942 = vmatprep.subr.bf16.mxu1 %v1026_v34 }
  0x23   :  { %266 = vmatmul.mubr.bf16.vlgmr.msra.gmra.mxu0 %v996_v32 }
  0x24   :  { %449 = vmatmul.mubr.bf16.vlgmr.msra.gmra.mxu1 %v999_v35  ;;  %273 = vmatprep.mubr.bf16.mxu0 %v1002_v37 }
  0x25   :  { %456 = vmatprep.mubr.bf16.mxu1 %v1004_v38  ;;  %915 = vmatpush3.bf16.msra.mxu0 %v1014_v42 }
  0x26   :  { %916 = vmatprep.subr.bf16.mxu0 %v1026_v34  ;;  %943 = vmatpush3.bf16.msra.mxu1 %v1022_v53 }
  0x27   :  { %944 = vmatprep.subr.bf16.mxu1 %v1026_v34 }
  0x29   :  { %917 = vmatpush3.bf16.msra.mxu0 %v1015_v44  ;;  %v1025_v44 = vld [vmem:[%s1309_s5] sm:$0xff]  }
  0x2a   :  { %918 = vmatprep.subr.bf16.mxu0 %v1026_v34  ;;  %945 = vmatpush3.bf16.msra.mxu1 %v1023_v54 }
  0x2b   :  { %274 = vmatmul.mubr.bf16.gmra.mxu0 %v1006_v39  ;;  %946 = vmatprep.subr.bf16.mxu1 %v1026_v34 }
  0x2c   :  { %457 = vmatmul.mubr.bf16.gmra.mxu1 %v1007_v40  ;;  %281 = vmatprep.mubr.bf16.mxu0 %v1008_v41 }
  0x2d   :  { %464 = vmatprep.mubr.bf16.mxu1 %v1010_v43  ;;  %919 = vmatpush3.bf16.msra.mxu0 %v1016_v45 }
  0x2e   :  { %920 = vmatprep.subr.bf16.mxu0 %v1026_v34  ;;  %947 = vmatpush3.bf16.msra.mxu1 %v1024_v55 }
  0x2f   :  { %948 = vmatprep.subr.bf16.mxu1 %v1026_v34 }
  0x31   :  { %921 = vmatpush3.bf16.msra.mxu0 %v1017_v48 }
  0x32   :  { %922 = vmatprep.subr.bf16.mxu0 %v1026_v34  ;;  %949 = vmatpush3.bf16.msra.mxu1 %v1025_v44 }
  0x33   :  { %282 = vmatmul.mubr.bf16.gmra.mxu0 %v1012_v46 }
  0x34   :  { %465 = vmatmul.mubr.bf16.gmra.mxu1 %v1013_v47  ;;  %930 = vmatprep.mubr.msk.bf16.mxu0 %vm1027_vm0, %v1026_v34 }
  0x35   :  { %923 = vmatpush3.bf16.msra.mxu0 %v1018_v49  ;;  %950 = vmatprep.mubr.msk.bf16.mxu1 %vm1027_vm0, %v1026_v34 }
  0x36   :  { %924 = vmatprep.subr.bf16.mxu0 %v1026_v34 }
  0x39   :  { %925 = vmatpush3.bf16.msra.mxu0 %v1019_v50 }
  0x3a   :  { %926 = vmatprep.subr.bf16.mxu0 %v1026_v34 }
  0x3d   :  { %927 = vmatpush3.bf16.msra.mxu0 %v1020_v51 }
  0x3e   :  { %928 = vmatprep.subr.bf16.mxu0 %v1026_v34 }
  0x41   :  { %929 = vmatpush3.bf16.msra.mxu0 %v1021_v52 }
  0xe3   :  { %v844_v56 = vpop.f32.mrf.mxu0 }
  0xe4   :  { %v878_v57 = vpop.f32.mrf.mxu1 }
  0xe5   :  { %v845_v58 = vpop.f32.mrf.mxu0 }
  0xe6   :  { %v879_v59 = vpop.f32.mrf.mxu1  ;;  %v846_v60 = vadd.f32 %v845_v58, %v844_v56 }
  0xe7   :  { %v880_v61 = vadd.f32 %v879_v59, %v878_v57  ;;  %v847_v62 = vpop.f32.mrf.mxu0 }
  0xe8   :  { %v881_v63 = vpop.f32.mrf.mxu1 }
  0xe9   :  { %v848_v0 = vpop.f32.mrf.mxu0  ;;  %v451_v3 = vadd.f32 %v880_v61, %v846_v60 }
  0xea   :  { %v849_v1 = vadd.f32 %v848_v0, %v847_v62  ;;  %v882_v2 = vpop.f32.mrf.mxu1 }
  0xeb   :  { %v883_v4 = vadd.f32 %v882_v2, %v881_v63  ;;  %v850_v5 = vpop.f32.mrf.mxu0  ;;  %v473_v10 = vmax.f32 %v451_v3, 0.0  ;;  %v827_v3 = vld [vmem:[%s1310_s6] ss:$0 sm:$0xff] }
  0xec   :  { %v884_v6 = vpop.f32.mrf.mxu1 }
  0xed   :  { %v454_v7 = vadd.f32 %v883_v4, %v849_v1  ;;  %v851_v8 = vpop.f32.mrf.mxu0 }
  0xee   :  { %v885_v9 = vpop.f32.mrf.mxu1  ;;  %v852_v12 = vadd.f32 %v851_v8, %v850_v5 }
  0xef   :  { %v474_v11 = vmax.f32 %v454_v7, 0.0  ;;  %v886_v13 = vadd.f32 %v885_v9, %v884_v6  ;;  %v853_v14 = vpop.f32.mrf.mxu0 }
  0xf0   :  { %v887_v15 = vpop.f32.mrf.mxu1 }
  0xf1   :  { %v479_v16 = vpack.c.bf16 %v474_v11, %v473_v10  ;;  %v854_v17 = vpop.f32.mrf.mxu0  ;;  %v459_v20 = vadd.f32 %v886_v13, %v852_v12 }
  0xf2   :  { %v855_v18 = vadd.f32 %v854_v17, %v853_v14  ;;  %v888_v19 = vpop.f32.mrf.mxu1 }
  0xf3   :  { %v889_v21 = vadd.f32 %v888_v19, %v887_v15  ;;  %931 = vmatmul.mubr.bf16.vlgmr.msra.gmra.mxu0 %v479_v16  ;;  %v856_v22 = vpop.f32.mrf.mxu0  ;;  %v475_v27 = vmax.f32 %v459_v20, 0.0 }
  0xf4   :  { %v890_v23 = vpop.f32.mrf.mxu1  ;;  %934 = vmatprep.mubr.msk.bf16.mxu0 %vm1027_vm0, %v1026_v34 }
  0xf5   :  { %v462_v24 = vadd.f32 %v889_v21, %v855_v18  ;;  %v857_v25 = vpop.f32.mrf.mxu0 }
  0xf6   :  { %v891_v26 = vpop.f32.mrf.mxu1  ;;  %v858_v29 = vadd.f32 %v857_v25, %v856_v22 }
  0xf7   :  { %v476_v28 = vmax.f32 %v462_v24, 0.0  ;;  %v892_v30 = vadd.f32 %v891_v26, %v890_v23  ;;  %v859_v31 = vpop.f32.mrf.mxu0 }
  0xf8   :  { %v893_v32 = vpop.f32.mrf.mxu1 }
  0xf9   :  { %v860_v33 = vpop.f32.mrf.mxu0  ;;  %v480_v35 = vpack.c.bf16 %v476_v28, %v475_v27  ;;  %v467_v38 = vadd.f32 %v892_v30, %v858_v29 }
  0xfa   :  { %v861_v36 = vadd.f32 %v860_v33, %v859_v31  ;;  %v894_v37 = vpop.f32.mrf.mxu1 }
  0xfb   :  { %v895_v39 = vadd.f32 %v894_v37, %v893_v32  ;;  %935 = vmatmul.mubr.bf16.gmra.mxu0 %v480_v35  ;;  %v477_v41 = vmax.f32 %v467_v38, 0.0  ;;  %v750_v32 = vstv %s1311_s7 }
  0xfc   :  { %938 = vmatprep.mubr.msk.bf16.mxu0 %vm1027_vm0, %v1026_v34 }
  0xfd   :  { %v470_v40 = vadd.f32 %v895_v39, %v861_v36 }
  0xff   :  { %v478_v42 = vmax.f32 %v470_v40, 0.0 }
 0x101   :  { %v481_v43 = vpack.c.bf16 %v478_v42, %v477_v41 }
 0x103   :  { %939 = vmatmul.mubr.bf16.gmra.mxu0 %v481_v43 }
 0x1b3   :  { %v580_v45 = vpop.f32.mrf.mxu0 }
 0x1b4   :  { %v603_v48 = vmax.f32 %v580_v45, 0.0 }
 0x1b5   :  { %v932_v46 = vpop.f32.mrf.mxu0 }
 0x1b7   :  { %v583_v47 = vpop.f32.mrf.mxu0 }
 0x1b8   :  { %v604_v49 = vmax.f32 %v583_v47, 0.0 }
 0x1b9   :  { %v933_v50 = vpop.f32.mrf.mxu0 }
 0x1ba   :  { %v609_v51 = vpack.c.bf16 %v604_v49, %v603_v48 }
 0x1bb   :  { %v588_v52 = vpop.f32.mrf.mxu0 }
 0x1bc   :  { %951 = vmatmul.mubr.msk.bf16.vlgmr.msra.gmra.mxu1 %vm644_vm1, %v609_v51  ;;  %v605_v55 = vmax.f32 %v588_v52, 0.0 }
 0x1bd   :  { %v936_v53 = vpop.f32.mrf.mxu0  ;;  %954 = vmatprep.mubr.msk.bf16.mxu1 %vm1027_vm0, %v1026_v34 }
 0x1bf   :  { %v591_v54 = vpop.f32.mrf.mxu0 }
 0x1c0   :  { %v606_v56 = vmax.f32 %v591_v54, 0.0 }
 0x1c1   :  { %v937_v57 = vpop.f32.mrf.mxu0 }
 0x1c2   :  { %v610_v58 = vpack.c.bf16 %v606_v56, %v605_v55 }
 0x1c3   :  { %v596_v59 = vpop.f32.mrf.mxu0 }
 0x1c4   :  { %955 = vmatmul.mubr.msk.bf16.gmra.mxu1 %vm644_vm1, %v610_v58  ;;  %v607_v62 = vmax.f32 %v596_v59, 0.0 }
 0x1c5   :  { %v940_v60 = vpop.f32.mrf.mxu0  ;;  %958 = vmatprep.mubr.msk.bf16.mxu1 %vm1027_vm0, %v1026_v34 }
 0x1c7   :  { %v599_v61 = vpop.f32.mrf.mxu0 }
 0x1c8   :  { %v608_v63 = vmax.f32 %v599_v61, 0.0 }
 0x1c9   :  { %v941_v0 = vpop.f32.mrf.mxu0 }
 0x1ca   :  { %v611_v1 = vpack.c.bf16 %v608_v63, %v607_v62 }
 0x1cc   :  { %959 = vmatmul.mubr.msk.bf16.gmra.mxu1 %vm644_vm1, %v611_v1 }
 0x27c   :  { %v688_v2 = vpop.f32.mrf.mxu1 }
 0x27d   :  { %v711_v4 = vmax.f32 %v688_v2, 0.0 }
 0x27e   :  { %v952_v5 = vpop.f32.mrf.mxu1 }
 0x27f   :  { %v724_v6 = vmul.f32 %v827_v3, %v711_v4 }
 0x280   :  { %v691_v7 = vpop.f32.mrf.mxu1 }
 0x281   :  { %v712_v8 = vmax.f32 %v691_v7, 0.0  ;;  %v731_v34 = vsel %vm730_vm2, %v724_v6, 0.0 }
 0x282   :  { %732 = vadd.xlane.f32.xlu0 %v731_v34  ;;  %v953_v9 = vpop.f32.mrf.mxu1 }
 0x283   :  { %v725_v10 = vmul.f32 %v827_v3, %v712_v8 }
 0x284   :  { %v696_v11 = vpop.f32.mrf.mxu1 }
 0x285   :  { %v713_v12 = vmax.f32 %v696_v11, 0.0  ;;  %v734_v13 = vsel %vm730_vm2, %v725_v10, 0.0 }
 0x286   :  { %735 = vadd.xlane.f32.xlu0 %v734_v13  ;;  %v956_v14 = vpop.f32.mrf.mxu1 }
 0x287   :  { %v726_v15 = vmul.f32 %v827_v3, %v713_v12 }
 0x288   :  { %v699_v16 = vpop.f32.mrf.mxu1 }
 0x289   :  { %v714_v17 = vmax.f32 %v699_v16, 0.0  ;;  %v737_v18 = vsel %vm730_vm2, %v726_v15, 0.0 }
 0x28a   :  { %738 = vadd.xlane.f32.xlu1 %v737_v18  ;;  %v957_v19 = vpop.f32.mrf.mxu1 }
 0x28b   :  { %v727_v20 = vmul.f32 %v827_v3, %v714_v17 }
 0x28c   :  { %v704_v21 = vpop.f32.mrf.mxu1 }
 0x28d   :  { %v715_v22 = vmax.f32 %v704_v21, 0.0  ;;  %v740_v23 = vsel %vm730_vm2, %v727_v20, 0.0 }
 0x28e   :  { %741 = vadd.xlane.f32.xlu1 %v740_v23  ;;  %v960_v24 = vpop.f32.mrf.mxu1 }
 0x28f   :  { %v728_v25 = vmul.f32 %v827_v3, %v715_v22 }
 0x290   :  { %v707_v26 = vpop.f32.mrf.mxu1 }
 0x291   :  { %v716_v27 = vmax.f32 %v707_v26, 0.0  ;;  %v743_v28 = vsel %vm730_vm2, %v728_v25, 0.0 }
 0x292   :  { %744 = vadd.xlane.f32.xlu0 %v743_v28  ;;  %v961_v29 = vpop.f32.mrf.mxu1 }
 0x293   :  { %v729_v30 = vmul.f32 %v827_v3, %v716_v27 }
 0x295   :  { %v746_v31 = vsel %vm730_vm2, %v729_v30, 0.0 }
 0x296   :  { %747 = vadd.xlane.f32.xlu1 %v746_v31 }
 0x30b   :  { %v733_v33 = vpop.xlane.xlu0 %732 }
 0x30c   :  { %v751_v35 = vadd.f32 %v750_v32, %v733_v33 }
 0x30e   :  { %758 = vst.msk [vmem:[%s1312_s8] sm:$0xff] %vm757_vm3, %v751_v35 }
 0x30f   :  { %v736_v36 = vpop.xlane.xlu0 %735 }
 0x310   :  { %v752_v37 = vadd.f32 %v750_v32, %v736_v36 }
 0x312   :  { %759 = vst.msk [vmem:[%s1312_s8 + $0x8] sm:$0xff] %vm757_vm3, %v752_v37 }
 0x313   :  { %v739_v38 = vpop.xlane.xlu1 %738 }
 0x314   :  { %v753_v39 = vadd.f32 %v750_v32, %v739_v38 }
 0x316   :  { %760 = vst.msk [vmem:[%s1312_s8 + $0x10] sm:$0xff] %vm757_vm3, %v753_v39 }
 0x317   :  { %v742_v40 = vpop.xlane.xlu1 %741 }
 0x318   :  { %v754_v41 = vadd.f32 %v750_v32, %v742_v40 }
 0x31a   :  { %761 = vst.msk [vmem:[%s1312_s8 + $0x18] sm:$0xff] %vm757_vm3, %v754_v41 }
 0x31b   :  { %v745_v42 = vpop.xlane.xlu0 %744 }
 0x31c   :  { %v755_v43 = vadd.f32 %v750_v32, %v745_v42 }
 0x31e   :  { %762 = vst.msk [vmem:[%s1312_s8 + $0x20] sm:$0xff] %vm757_vm3, %v755_v43 }
 0x31f   :  { %v748_v44 = vpop.xlane.xlu1 %747 }
 0x320   :  { %v756_v45 = vadd.f32 %v750_v32, %v748_v44 }
 0x322   :  { %763 = vst.msk [vmem:[%s1312_s8 + $0x28] sm:$0xff] %vm757_vm3, %v756_v45 }

</bundles_post_ra>
